<compile_context>
chip_gen: v5e
topology: v5e:2x2
jax: 0.10.0
libtpu: 0.0.40
codegen_flags: <defaults>
</compile_context>

<pallas_src>
import functools
import math

import jax
import jax.numpy as jnp
from jax.experimental import pallas as pl
from jax.experimental.pallas import tpu as pltpu


_FALLBACK_VMEM_LIMIT = 32 * 1024 * 1024  # safe on every generation


def _round_up(x, m):
    return ((x + m - 1) // m) * m


def _vmem_limit_bytes():
    """Per-generation scoped-VMEM budget (conservative 32 MiB fallback)."""
    try:
        cap = int(pltpu.get_tpu_info().vmem_capacity_bytes)
        # v7x (64 MiB physical) -> 48 MiB; v5e/v6e (128 MiB) -> 96 MiB.
        return min(cap * 3 // 4, 96 * 1024 * 1024)
    except Exception:  # query unavailable -> lowest common denominator
        return _FALLBACK_VMEM_LIMIT


# --------------------------------------------------------------------------
# In-kernel helpers
# --------------------------------------------------------------------------
def _masked_log_softmax(logits, num_classes):
    """log_softmax over the last dim with padded class columns masked out."""
    col = jax.lax.broadcasted_iota(jnp.int32, logits.shape, 1)
    logits = jnp.where(col < num_classes, logits, jnp.float32(-1e30))
    m = jnp.max(logits, axis=1, keepdims=True)
    shifted = logits - m
    lse = jnp.log(jnp.sum(jnp.exp(shifted), axis=1, keepdims=True))
    return shifted - lse


def _x_tile(x_ref, kk, tk, resident_x):
    """Reduction-tile view of x: slice the resident slab or take the streamed block."""
    if resident_x:
        start = pl.multiple_of(kk * tk, tk)
        return x_ref[pl.ds(start, tk), :]
    return x_ref[...]


# --------------------------------------------------------------------------
# Kernels
# --------------------------------------------------------------------------
def _prop_kernel(adj_ref, x_ref, out_ref, acc_ref, *, tk, resident_x):
    """One hop of propagation: out = Â @ x, tiled over (rows, reduction cols).

    adj_ref: [TM, TK] bf16
    x_ref:   [N_pad, F_pad] bf16 (resident, constant index)  or  [TK, F_pad] (streamed)
    out_ref: [TM, F_pad] bf16     acc_ref: [TM, F_pad] f32 scratch
    Grid: (row tile i [parallel], reduction tile kk [arbitrary, last]).
    """
    kk = pl.program_id(1)
    prod = jnp.dot(adj_ref[...], _x_tile(x_ref, kk, tk, resident_x),
                   preferred_element_type=jnp.float32)

    @pl.when(kk == 0)
    def _():
        acc_ref[...] = prod          # first step: write, don't zero+accumulate

    @pl.when(kk != 0)
    def _():
        acc_ref[...] += prod

    @pl.when(kk == pl.num_programs(1) - 1)
    def _():
        out_ref[...] = acc_ref[...].astype(out_ref.dtype)


def _prop_head_kernel(adj_ref, x_ref, w_ref, b_ref, out_ref, acc_ref, *,
                      tk, resident_x, num_classes):
    """Final hop fused with the head: out = log_softmax((Â @ x) @ W + b).

    adj_ref: [TM, TK] bf16          x_ref: resident [N_pad, F_pad] or streamed [TK, F_pad]
    w_ref:   [F_pad, C_pad] bf16    b_ref: [1, C_pad] f32
    out_ref: [TM, C_pad] f32        acc_ref: [TM, F_pad] f32 scratch
    """
    kk = pl.program_id(1)
    prod = jnp.dot(adj_ref[...], _x_tile(x_ref, kk, tk, resident_x),
                   preferred_element_type=jnp.float32)

    @pl.when(kk == 0)
    def _():
        acc_ref[...] = prod

    @pl.when(kk != 0)
    def _():
        acc_ref[...] += prod

    @pl.when(kk == pl.num_programs(1) - 1)
    def _():
        h = acc_ref[...].astype(w_ref.dtype)
        logits = jnp.dot(h, w_ref[...], preferred_element_type=jnp.float32)
        logits = logits + b_ref[...]
        out_ref[...] = _masked_log_softmax(logits, num_classes).astype(out_ref.dtype)


def _head_kernel(x_ref, w_ref, b_ref, out_ref, *, num_classes):
    """Standalone head (used only when K == 0): log_softmax(x @ W + b)."""
    logits = jnp.dot(x_ref[...], w_ref[...], preferred_element_type=jnp.float32)
    logits = logits + b_ref[...]
    out_ref[...] = _masked_log_softmax(logits, num_classes).astype(out_ref.dtype)


# --------------------------------------------------------------------------
# pallas_call wrappers
# --------------------------------------------------------------------------
def _x_spec(n_pad, f_pad, tk, resident_x):
    if resident_x:
        # Constant block index -> Pallas DMAs x into VMEM once and skips re-DMA.
        return pl.BlockSpec((n_pad, f_pad), lambda i, kk: (0, 0))
    return pl.BlockSpec((tk, f_pad), lambda i, kk: (kk, 0))


def _propagate(adj_p, x_p, *, tm, tk, resident_x, vmem_limit):
    """x_new = Â_pad @ x_pad, gridded over (row tiles, reduction tiles)."""
    n_pad, f_pad = x_p.shape
    grid = (n_pad // tm, n_pad // tk)
    kernel = functools.partial(_prop_kernel, tk=tk, resident_x=resident_x)
    return pl.pallas_call(
        kernel,
        out_shape=jax.ShapeDtypeStruct((n_pad, f_pad), x_p.dtype),
        grid_spec=pltpu.PrefetchScalarGridSpec(
            num_scalar_prefetch=0,
            grid=grid,
            in_specs=[
                pl.BlockSpec((tm, tk), lambda i, kk: (i, kk)),   # adjacency tile
                _x_spec(n_pad, f_pad, tk, resident_x),           # x (resident/streamed)
            ],
            out_specs=pl.BlockSpec((tm, f_pad), lambda i, kk: (i, 0)),
            scratch_shapes=[pltpu.VMEM((tm, f_pad), jnp.float32)],
        ),
        compiler_params=pltpu.CompilerParams(
            dimension_semantics=("parallel", "arbitrary"),
            vmem_limit_bytes=vmem_limit,
        ),
    )(adj_p, x_p)


def _propagate_head(adj_p, x_p, w_p, b_p, *, tm, tk, num_classes,
                    resident_x, vmem_limit):
    """Final hop fused with linear + masked log_softmax; lane-dense f32 output."""
    n_pad, f_pad = x_p.shape
    c_pad = w_p.shape[1]
    grid = (n_pad // tm, n_pad // tk)
    kernel = functools.partial(_prop_head_kernel, tk=tk, resident_x=resident_x,
                               num_classes=num_classes)
    return pl.pallas_call(
        kernel,
        out_shape=jax.ShapeDtypeStruct((n_pad, c_pad), jnp.float32),
        grid_spec=pltpu.PrefetchScalarGridSpec(
            num_scalar_prefetch=0,
            grid=grid,
            in_specs=[
                pl.BlockSpec((tm, tk), lambda i, kk: (i, kk)),      # adjacency tile
                _x_spec(n_pad, f_pad, tk, resident_x),              # x
                pl.BlockSpec((f_pad, c_pad), lambda i, kk: (0, 0)), # W (resident)
                pl.BlockSpec((1, c_pad), lambda i, kk: (0, 0)),     # bias
            ],
            out_specs=pl.BlockSpec((tm, c_pad), lambda i, kk: (i, 0)),
            scratch_shapes=[pltpu.VMEM((tm, f_pad), jnp.float32)],
        ),
        compiler_params=pltpu.CompilerParams(
            dimension_semantics=("parallel", "arbitrary"),
            vmem_limit_bytes=vmem_limit,
        ),
    )(adj_p, x_p, w_p, b_p)


def _linear_logsoftmax(x_p, w_p, b_p, *, tm, num_classes, vmem_limit):
    """Standalone head for the K == 0 corner case."""
    n_pad, f_pad = x_p.shape
    c_pad = w_p.shape[1]
    kernel = functools.partial(_head_kernel, num_classes=num_classes)
    return pl.pallas_call(
        kernel,
        out_shape=jax.ShapeDtypeStruct((n_pad, c_pad), jnp.float32),
        grid_spec=pltpu.PrefetchScalarGridSpec(
            num_scalar_prefetch=0,
            grid=(n_pad // tm,),
            in_specs=[
                pl.BlockSpec((tm, f_pad), lambda i: (i, 0)),
                pl.BlockSpec((f_pad, c_pad), lambda i: (0, 0)),
                pl.BlockSpec((1, c_pad), lambda i: (0, 0)),
            ],
            out_specs=pl.BlockSpec((tm, c_pad), lambda i: (i, 0)),
        ),
        compiler_params=pltpu.CompilerParams(
            dimension_semantics=("parallel",),
            vmem_limit_bytes=vmem_limit,
        ),
    )(x_p, w_p, b_p)


# --------------------------------------------------------------------------
# Glue: dense normalized adjacency (PyG gcn_norm-style), built directly padded
# --------------------------------------------------------------------------
def _normalized_adjacency_padded(edge_index, n, n_pad, out_dtype):
    """Â = D^-1/2 (A + I) D^-1/2, dense [n_pad, n_pad] in out_dtype.

    Duplicate edges accumulate (scatter-add, like PyG's degree computation);
    self-loops are replaced by a single weight-1 loop per real node
    (add_remaining_self_loops semantics).  Padded rows/cols stay exactly zero.
    """
    src, dst = edge_index[0], edge_index[1]
    ones = jnp.ones(src.shape[0], jnp.float32)
    adj = jnp.zeros((n_pad, n_pad), jnp.float32).at[dst, src].add(ones)
    idx = jnp.arange(n_pad)
    adj = adj.at[idx, idx].set(jnp.where(idx < n, 1.0, 0.0))
    deg = jnp.sum(adj, axis=1)
    dinv = jnp.where(deg > 0.0, jax.lax.rsqrt(deg), 0.0)
    # Fold D^-1/2 scaling and the matmul-dtype cast into one elementwise pass.
    return (dinv[:, None] * adj * dinv[None, :]).astype(out_dtype)


# --------------------------------------------------------------------------
# SGC forward
# --------------------------------------------------------------------------
def sgc_forward(x, edge_index, weight, bias, *, k,
                tm=512, tk=1024, matmul_dtype=jnp.bfloat16):
    """SGC forward.  x: [N, F] f32, edge_index: [2, E] i32, weight: [C, F], bias: [C]."""
    n, f = x.shape
    c = weight.shape[0]
    vmem_limit = _vmem_limit_bytes()
    bpe = jnp.dtype(matmul_dtype).itemsize

    # ---- padding to lane/sublane-friendly, tile-divisible shapes ----
    n_pad = _round_up(n, 128)
    f_pad = _round_up(f, 128)
    c_pad = _round_up(c, 128)

    # Tile plan: large tiles, but keep >=4 row tiles when possible so the
    # "parallel" row axis shards across both v7x TensorCores.
    tm_cap = max(128, ((n_pad // 4) // 128) * 128)
    tm = min(tm, n_pad, tm_cap)
    tk = min(tk, n_pad)
    if tk >= 256:
        tk = (tk // 256) * 256          # multiple of 256 for the 256-wide MXU
    n_pad = _round_up(n, math.lcm(tm, tk))

    # Resident-x feasibility under the per-generation VMEM budget
    # (assume double-buffering of every BlockSpec operand to stay conservative).
    resident_bytes = 2 * n_pad * f_pad * bpe
    other_bytes = (2 * tm * tk * bpe            # adjacency tiles
                   + 2 * tm * f_pad * bpe       # prop output block
                   + tm * f_pad * 4             # f32 accumulator
                   + 2 * f_pad * c_pad * bpe    # W (head hop)
                   + 2 * tm * c_pad * 4         # head output block
                   + 2 * c_pad * 4)             # bias
    resident_x = (resident_bytes + other_bytes) <= int(0.8 * vmem_limit)

    # ---- glue: normalized adjacency + padded operands ----
    adj_p = _normalized_adjacency_padded(edge_index, n, n_pad, matmul_dtype)
    x_p = jnp.zeros((n_pad, f_pad), matmul_dtype).at[:n, :f].set(
        x.astype(matmul_dtype))
    w_p = jnp.zeros((f_pad, c_pad), matmul_dtype).at[:f, :c].set(
        weight.T.astype(matmul_dtype))
    b_p = jnp.zeros((1, c_pad), jnp.float32).at[0, :c].set(
        bias.astype(jnp.float32))

    # ---- K propagation hops; the last hop is fused with linear+log_softmax ----
    if k == 0:
        out_p = _linear_logsoftmax(x_p, w_p, b_p, tm=tm, num_classes=c,
                                   vmem_limit=vmem_limit)
    else:
        h = x_p
        for _ in range(k - 1):
            # TODO(synk): fuse all K hops into one pallas_call with h resident in
            # f32 VMEM scratch (removes the remaining bf16 HBM round trips of h).
            h = _propagate(adj_p, h, tm=tm, tk=tk,
                           resident_x=resident_x, vmem_limit=vmem_limit)
        out_p = _propagate_head(adj_p, h, w_p, b_p, tm=tm, tk=tk, num_classes=c,
                                resident_x=resident_x, vmem_limit=vmem_limit)

    # ---- un-pad ----
    return out_p[:n, :c]


# --------------------------------------------------------------------------
# Pure-JAX reference (f32 throughout) for sanity checking
# --------------------------------------------------------------------------
def _reference(x, edge_index, weight, bias, *, k):
    n = x.shape[0]
    adj_norm = _normalized_adjacency_padded(edge_index, n, n, jnp.float32)
    h = x
    for _ in range(k):
        h = adj_norm @ h
    logits = h @ weight.T + bias
    return jax.nn.log_softmax(logits, axis=1)


if __name__ == "__main__":
    key = jax.random.PRNGKey(0)
    N, F_IN, C, K, E = 16, 8, 4, 2, 48   # nodes, features, classes, hops, edges

    k_x, k_e, k_w, k_b = jax.random.split(key, 4)
    x = jax.random.normal(k_x, (N, F_IN), dtype=jnp.float32)
    edge_index = jax.random.randint(k_e, (2, E), 0, N, dtype=jnp.int32)
    # Deterministic linear params (SGConv's internal nn.Linear(F_in, C)).
    weight = jax.random.normal(k_w, (C, F_IN), dtype=jnp.float32) * 0.1
    bias = jax.random.normal(k_b, (C,), dtype=jnp.float32) * 0.1

    out = sgc_forward(x, edge_index, weight, bias, k=K)
    out = jax.block_until_ready(out)

    ref = _reference(x, edge_index, weight, bias, k=K)
    assert out.shape == (N, C)
    # bf16 MXU feeds with f32 accumulation -> loose tolerance vs f32 reference.
    max_diff = float(jnp.max(jnp.abs(out - ref)))
    assert jnp.allclose(out, ref, atol=3e-2, rtol=3e-2), (
        f"mismatch vs reference: max|diff|={max_diff}")

    print("KERNEL_OK")
</pallas_src>

<mosaic_0001>
module attributes {stable_mosaic.version = 11 : i64} {
  func.func @_prop_kernel(%arg0: i32, %arg1: i32, %arg2: memref<128x128xbf16, #tpu.memory_space<vmem>>, %arg3: memref<128x128xbf16, #tpu.memory_space<vmem>>, %arg4: memref<128x128xbf16, #tpu.memory_space<vmem>>, %arg5: memref<128x128xf32, #tpu.memory_space<vmem>>) attributes {dimension_semantics = [#tpu.dimension_semantics<parallel>, #tpu.dimension_semantics<arbitrary>], iteration_bounds = array<i64: 1, 1>, scalar_prefetch = 0 : i64, scratch_operands = 1 : i64, tpu.core_type = #tpu.core_type<tc>, window_params = [{transform_indices = @transform_0, window_bounds = array<i64: 128, 128>}, {pipeline_mode = #tpu.pipeline_mode<synchronous>, transform_indices = @transform_1, window_bounds = array<i64: 128, 128>}, {transform_indices = @transform_2, window_bounds = array<i64: 128, 128>}]} {
    %c0 = arith.constant 0 : index
    %c0_0 = arith.constant 0 : index
    %0 = vector.load %arg2[%c0, %c0_0] : memref<128x128xbf16, #tpu.memory_space<vmem>>, vector<128x128xbf16>
    %c128_i32 = arith.constant 128 : i32
    %1 = arith.muli %arg1, %c128_i32 : i32
    %2 = tpu.assume_multiple %1, 128 : i32
    %3 = arith.index_cast %2 : i32 to index
    %c0_1 = arith.constant 0 : index
    %4 = vector.load %arg3[%3, %c0_1] : memref<128x128xbf16, #tpu.memory_space<vmem>>, vector<128x128xbf16>
    %cst = arith.constant dense<0.000000e+00> : vector<128x128xf32>
    %5 = tpu.matmul %0, %4, %cst {dimension_numbers = #tpu.dot_dimension_numbers<[1], [0], [0], [1], [0, 0, 1, 1], [], []>} : vector<128x128xbf16>, vector<128x128xbf16>, vector<128x128xf32> -> vector<128x128xf32>
    %c0_i32 = arith.constant 0 : i32
    %6 = arith.cmpi eq, %arg1, %c0_i32 : i32
    %7 = arith.extui %6 : i1 to i32
    %c0_i32_2 = arith.constant 0 : i32
    %8 = arith.cmpi ne, %7, %c0_i32_2 : i32
    scf.if %8 {
      %c0_7 = arith.constant 0 : index
      %c0_8 = arith.constant 0 : index
      %15 = vector.load %arg5[%c0_7, %c0_8] : memref<128x128xf32, #tpu.memory_space<vmem>>, vector<128x128xf32>
      tpu.vector_store %arg5[%c0_7, %c0_8], %5 {strides = array<i32>} : memref<128x128xf32, #tpu.memory_space<vmem>>, vector<128x128xf32>,
    } else {
    }
    %c0_i32_3 = arith.constant 0 : i32
    %9 = arith.cmpi ne, %arg1, %c0_i32_3 : i32
    %10 = arith.extui %9 : i1 to i32
    %c0_i32_4 = arith.constant 0 : i32
    %11 = arith.cmpi ne, %10, %c0_i32_4 : i32
    scf.if %11 {
      %c0_7 = arith.constant 0 : index
      %c0_8 = arith.constant 0 : index
      %15 = vector.load %arg5[%c0_7, %c0_8] : memref<128x128xf32, #tpu.memory_space<vmem>>, vector<128x128xf32>
      %16 = arith.addf %15, %5 : vector<128x128xf32>
      %c0_9 = arith.constant 0 : index
      %c0_10 = arith.constant 0 : index
      %17 = vector.load %arg5[%c0_9, %c0_10] : memref<128x128xf32, #tpu.memory_space<vmem>>, vector<128x128xf32>
      tpu.vector_store %arg5[%c0_9, %c0_10], %16 {strides = array<i32>} : memref<128x128xf32, #tpu.memory_space<vmem>>, vector<128x128xf32>,
    } else {
    }
    %c0_i32_5 = arith.constant 0 : i32
    %12 = arith.cmpi eq, %arg1, %c0_i32_5 : i32
    %13 = arith.extui %12 : i1 to i32
    %c0_i32_6 = arith.constant 0 : i32
    %14 = arith.cmpi ne, %13, %c0_i32_6 : i32
    scf.if %14 {
      %c0_7 = arith.constant 0 : index
      %c0_8 = arith.constant 0 : index
      %15 = vector.load %arg5[%c0_7, %c0_8] : memref<128x128xf32, #tpu.memory_space<vmem>>, vector<128x128xf32>
      %16 = arith.truncf %15 : vector<128x128xf32> to vector<128x128xbf16>
      %c0_9 = arith.constant 0 : index
      %c0_10 = arith.constant 0 : index
      %17 = vector.load %arg4[%c0_9, %c0_10] : memref<128x128xbf16, #tpu.memory_space<vmem>>, vector<128x128xbf16>
      tpu.vector_store %arg4[%c0_9, %c0_10], %16 {strides = array<i32>} : memref<128x128xbf16, #tpu.memory_space<vmem>>, vector<128x128xbf16>,
    } else {
    }
    return
  }
  func.func @transform_0(%arg0: i32, %arg1: i32) -> (i32, i32) {
    %c0_i32 = arith.constant 0 : i32
    return %arg0, %arg1 : i32, i32
  }
  func.func @transform_1(%arg0: i32, %arg1: i32) -> (i32, i32) {
    %c0_i32 = arith.constant 0 : i32
    %c0_i32_0 = arith.constant 0 : i32
    %c0_i32_1 = arith.constant 0 : i32
    return %c0_i32, %c0_i32_0 : i32, i32
  }
  func.func @transform_2(%arg0: i32, %arg1: i32) -> (i32, i32) {
    %c0_i32 = arith.constant 0 : i32
    %c0_i32_0 = arith.constant 0 : i32
    return %arg0, %c0_i32 : i32, i32
  }
}

</mosaic_0001>

<bundles_post_ra>
// kernel: tpu_custom_call.1
= control target key start
LH: loop header
LB: loop body
LE: loop exit
PB: predicated region body
PF: predicated region fallthrough
CT: control target
= control target key end

     0   :  { %7 = vsyncpa [#allocation4], 0  ;;  %s643_s0 = inlined_call_operand.hbm [shape: bf16[128,128], index: 0, kind: input, shape index: {}]   ;;  %s644_s1 = inlined_call_operand.hbm [shape: bf16[128,128], index: 1, kind: input, shape index: {}]   ;;  %s645_s2 = inlined_call_operand.hbm [shape: bf16[128,128], index: 2, kind: output, shape index: {}]  }
   0x1   :  { %8 = vsyncpa [#allocation7], 0 }
   0x2   :  { %9 = vsyncpa [#allocation5], 0  ;;  %s14_s11 = sshll.u32 %s643_s0, 4  ;;  %s605_s12 = smov [#allocation3]   ;;  %s15_s11 = int_to_ptr.hbm [resolvable:$true] %s14_s11 }
   0x3   :  { %s16_s13 = sshll.u32 %s605_s12, 4  ;;  %s27_s16 = sshll.u32 %s644_s1, 4  ;;  %s17_s13 = int_to_ptr.vmem [resolvable:$true] %s16_s13  ;;  %s28_s16 = int_to_ptr.hbm [resolvable:$true] %s27_s16 }
   0x4   :  { %s606_s17 = smov 64   ;;  %s607_s18 = smov 4  }
   0x5   :  { %22 = dma.hbm_to_vmem [thread:$0]  %s15_s11, 1024, %s17_s13, [#allocation4], %s606_s17, %s606_s17, %s607_s18  }
   0x6   :  { %s608_s19 = smov [#allocation6]  }
   0x7   :  { %s29_s20 = sshll.u32 %s608_s19, 4  ;;  %s30_s20 = int_to_ptr.vmem [resolvable:$true] %s29_s20 }
   0x8   :  { %35 = dma.hbm_to_vmem [thread:$0]  %s28_s16, 1024, %s30_s20, [#allocation7], %s606_s17, %s606_s17, %s607_s18  }
   0x9   :  { %599 = dma.done.wait [#allocation4], 1024  }
   0xa   :  { %600 = vsyncadd [#allocation4], 4294966272 }
   0xb   :  { %601 = dma.done.wait [#allocation7], 1024  }
   0xc   :  { %602 = vsyncadd [#allocation7], 4294966272  ;;  %v450_v0 = vld [vmem:[#allocation6 + $0x38] sm:$0xff]  ;;  %v449_v1 = vld [vmem:[#allocation6 + $0x30] sm:$0xff]  ;;  %s609_s0 = smov [#allocation8]   ;;  %s355_s23 = sshll.u32 %s645_s2, 4  ;;  %s356_s23 = int_to_ptr.hbm [resolvable:$true] %s355_s23 }
   0xd   :  { %177 = vmatpush.bf16.msra.mxu0 %v450_v0  ;;  %498 = vmatpush.bf16.msra.mxu1 %v450_v0  ;;  %v448_v2 = vld [vmem:[#allocation6 + $0x28] sm:$0xff]  ;;  %v447_v3 = vld [vmem:[#allocation6 + $0x20] sm:$0xff]  ;;  %v446_v4 = vld [vmem:[#allocation6 + $0x18] sm:$0xff]  ;;  %s353_s1 = sshll.u32 %s609_s0, 4  ;;  %s354_s1 = int_to_ptr.vmem [resolvable:$true] %s353_s1 }
   0xe   :  { %499 = vmatpush.bf16.msra.mxu2 %v450_v0  ;;  %500 = vmatpush.bf16.msra.mxu3 %v450_v0  ;;  %v445_v5 = vld [vmem:[#allocation6 + $0x10] sm:$0xff]  ;;  %v444_v6 = vld [vmem:[#allocation6 + $0x8] sm:$0xff]  ;;  %v443_v7 = vld [vmem:[#allocation6] sm:$0xff] }
   0xf   :  { %v435_v8 = vld [vmem:[#allocation3] sm:$0xff]  ;;  %v437_v9 = vld [vmem:[#allocation3 + $0x10] sm:$0xff]  ;;  %v436_v12 = vld [vmem:[#allocation3 + $0x8] sm:$0xff] }
  0x10   :  { %v439_v10 = vld [vmem:[#allocation3 + $0x20] sm:$0xff]  ;;  %v441_v11 = vld [vmem:[#allocation3 + $0x30] sm:$0xff]  ;;  %v438_v13 = vld [vmem:[#allocation3 + $0x18] sm:$0xff] }
  0x11   :  { %178 = vmatpush.bf16.msra.mxu0 %v449_v1  ;;  %501 = vmatpush.bf16.msra.mxu1 %v449_v1  ;;  %v440_v14 = vld [vmem:[#allocation3 + $0x28] sm:$0xff]  ;;  %v442_v15 = vld [vmem:[#allocation3 + $0x38] sm:$0xff] }
  0x12   :  { %502 = vmatpush.bf16.msra.mxu2 %v449_v1  ;;  %503 = vmatpush.bf16.msra.mxu3 %v449_v1 }
  0x15   :  { %179 = vmatpush.bf16.msra.mxu0 %v448_v2  ;;  %504 = vmatpush.bf16.msra.mxu1 %v448_v2 }
  0x16   :  { %505 = vmatpush.bf16.msra.mxu2 %v448_v2  ;;  %506 = vmatpush.bf16.msra.mxu3 %v448_v2 }
  0x19   :  { %180 = vmatpush.bf16.msra.mxu0 %v447_v3  ;;  %507 = vmatpush.bf16.msra.mxu1 %v447_v3 }
  0x1a   :  { %508 = vmatpush.bf16.msra.mxu2 %v447_v3  ;;  %509 = vmatpush.bf16.msra.mxu3 %v447_v3 }
  0x1d   :  { %181 = vmatpush.bf16.msra.mxu0 %v446_v4  ;;  %510 = vmatpush.bf16.msra.mxu1 %v446_v4 }
  0x1e   :  { %511 = vmatpush.bf16.msra.mxu2 %v446_v4  ;;  %512 = vmatpush.bf16.msra.mxu3 %v446_v4 }
  0x21   :  { %182 = vmatpush.bf16.msra.mxu0 %v445_v5  ;;  %513 = vmatpush.bf16.msra.mxu1 %v445_v5 }
  0x22   :  { %514 = vmatpush.bf16.msra.mxu2 %v445_v5  ;;  %515 = vmatpush.bf16.msra.mxu3 %v445_v5 }
  0x25   :  { %183 = vmatpush.bf16.msra.mxu0 %v444_v6  ;;  %516 = vmatpush.bf16.msra.mxu1 %v444_v6 }
  0x26   :  { %517 = vmatpush.bf16.msra.mxu2 %v444_v6  ;;  %518 = vmatpush.bf16.msra.mxu3 %v444_v6 }
  0x29   :  { %184 = vmatpush.bf16.msra.mxu0 %v443_v7  ;;  %519 = vmatpush.bf16.msra.mxu1 %v443_v7 }
  0x2a   :  { %520 = vmatpush.bf16.msra.mxu2 %v443_v7  ;;  %521 = vmatpush.bf16.msra.mxu3 %v443_v7 }
  0x2c   :  { %185 = vmatmul.bf16.vlgmr.msra.gmra.mxu0 %v435_v8  ;;  %195 = vmatmul.bf16.vlgmr.msra.gmra.mxu1 %v437_v9 }
  0x2d   :  { %205 = vmatmul.bf16.vlgmr.msra.gmra.mxu2 %v439_v10  ;;  %215 = vmatmul.bf16.vlgmr.msra.gmra.mxu3 %v441_v11 }
  0x3c   :  { %190 = vmatmul.bf16.gmra.mxu0 %v436_v12  ;;  %200 = vmatmul.bf16.gmra.mxu1 %v438_v13 }
  0x3d   :  { %210 = vmatmul.bf16.gmra.mxu2 %v440_v14  ;;  %220 = vmatmul.bf16.gmra.mxu3 %v442_v15 }
  0xa9   :  { %v186_v16 = vpop.f32.mrf.mxu0  ;;  %v196_v17 = vpop.f32.mrf.mxu1 }
  0xb0   :  { %v206_v18 = vpop.f32.mrf.mxu2  ;;  %v216_v19 = vpop.f32.mrf.mxu3 }
  0xb1   :  { %v188_v20 = vpop.f32.mrf.mxu0  ;;  %v198_v21 = vpop.f32.mrf.mxu1 }
  0xb2   :  { %v454_v22 = vpack.c.bf16 %v188_v20, %v186_v16  ;;  %v464_v23 = vpack.c.bf16 %v198_v21, %v196_v17 }
  0xb4   :  { %455 = vst [vmem:[#allocation8] sm:$0xff] %v454_v22  }
  0xb5   :  { %492 = vst [vmem:[#allocation8 + $0x10] sm:$0xff] %v464_v23  }
  0xb8   :  { %v208_v24 = vpop.f32.mrf.mxu2  ;;  %v218_v25 = vpop.f32.mrf.mxu3 }
  0xb9   :  { %v474_v26 = vpack.c.bf16 %v208_v24, %v206_v18  ;;  %v484_v27 = vpack.c.bf16 %v218_v25, %v216_v19  ;;  %v191_v28 = vpop.f32.mrf.mxu0  ;;  %v201_v29 = vpop.f32.mrf.mxu1 }
  0xbb   :  { %494 = vst [vmem:[#allocation8 + $0x20] sm:$0xff] %v474_v26  }
  0xbc   :  { %496 = vst [vmem:[#allocation8 + $0x30] sm:$0xff] %v484_v27  }
  0xc0   :  { %v211_v30 = vpop.f32.mrf.mxu2  ;;  %v221_v31 = vpop.f32.mrf.mxu3 }
  0xc1   :  { %v193_v32 = vpop.f32.mrf.mxu0  ;;  %v203_v33 = vpop.f32.mrf.mxu1 }
  0xc2   :  { %v459_v34 = vpack.c.bf16 %v193_v32, %v191_v28  ;;  %v469_v35 = vpack.c.bf16 %v203_v33, %v201_v29 }
  0xc4   :  { %491 = vst [vmem:[#allocation8 + $0x8] sm:$0xff] %v459_v34  }
  0xc5   :  { %493 = vst [vmem:[#allocation8 + $0x18] sm:$0xff] %v469_v35  }
  0xc8   :  { %v213_v36 = vpop.f32.mrf.mxu2  ;;  %v223_v37 = vpop.f32.mrf.mxu3 }
  0xc9   :  { %v479_v38 = vpack.c.bf16 %v213_v36, %v211_v30  ;;  %v489_v39 = vpack.c.bf16 %v223_v37, %v221_v31 }
  0xcb   :  { %495 = vst [vmem:[#allocation8 + $0x28] sm:$0xff] %v479_v38  }
  0xcc   :  { %497 = vst [vmem:[#allocation8 + $0x38] sm:$0xff] %v489_v39  }
  0xcd   :  { %361 = dma.vmem_to_hbm [thread:$0]  %s354_s1, 1024, %s356_s23, [#allocation5], %s606_s17, %s606_s17, %s607_s18  }
  0xce   :  { %603 = dma.done.wait [#allocation5], 1024  }
  0xcf   :  { %604 = vsyncadd [#allocation5], 4294966272 }
  0xd0   :  { %366 = vsyncpa [#allocation4], 1 }
  0xd1   :  { %367 = vsyncpa [#allocation7], 1 }
  0xd2   :  { %368 = vsyncpa [#allocation5], 1 }

</bundles_post_ra>
